<compile_context>
chip_gen: v6e
topology: v6e:2x2x1
jax: 0.10.0
libtpu: 0.0.40
codegen_flags: <defaults>
</compile_context>

<pallas_src>
import jax
import jax.numpy as jnp
import numpy as np
from jax.experimental import pallas as pl
from jax.experimental.pallas import tpu as pltpu

_VMEM_LIMIT_BYTES = 32 * 1024 * 1024  # fits scoped VMEM on v5e/v6e/v7x


def _pick_hw_tile(hw, max_tile=4096):
    """Largest multiple-of-128 divisor of hw (capped) -> lane-dense blocks."""
    best = 0
    t = 128
    while t <= min(hw, max_tile):
        if hw % t == 0:
            best = t
        t += 128
    return best


# ---------------------------------------------------------------------------
# Pass 1: per-input-channel sum and Gram matrix (reads x once, tiny outputs).
# ---------------------------------------------------------------------------
def _stats_kernel(x_ref, sum_ref, gram_ref):
    # x_ref: [Cin, TILE_HW]; sum_ref: [Cin, 1]; gram_ref: [Cin, Cin]
    @pl.when((pl.program_id(0) == 0) & (pl.program_id(1) == 0))
    def _init():
        sum_ref[...] = jnp.zeros_like(sum_ref)
        gram_ref[...] = jnp.zeros_like(gram_ref)

    x = x_ref[...].astype(jnp.float32)
    sum_ref[...] += jnp.sum(x, axis=-1, keepdims=True)
    # x @ x.T without an explicit transpose (contract the lane axis of both).
    gram_ref[...] += jax.lax.dot_general(
        x, x, (((1,), (1,)), ((), ())), preferred_element_type=jnp.float32)


def _input_stats(x3, tile):
    nt, cin, hw = x3.shape
    grid = (nt, hw // tile)
    return pl.pallas_call(
        _stats_kernel,
        out_shape=(jax.ShapeDtypeStruct((cin, 1), jnp.float32),
                   jax.ShapeDtypeStruct((cin, cin), jnp.float32)),
        grid_spec=pltpu.PrefetchScalarGridSpec(
            num_scalar_prefetch=0,
            grid=grid,
            in_specs=[pl.BlockSpec((None, cin, tile), lambda i, j: (i, 0, j))],
            out_specs=(pl.BlockSpec((cin, 1), lambda i, j: (0, 0)),
                       pl.BlockSpec((cin, cin), lambda i, j: (0, 0))),
        ),
        compiler_params=pltpu.CompilerParams(
            dimension_semantics=("arbitrary", "arbitrary"),  # reduction axes
            vmem_limit_bytes=_VMEM_LIMIT_BYTES),
        cost_estimate=pl.CostEstimate(
            flops=2 * nt * hw * cin * cin + nt * hw * cin,
            transcendentals=0,
            bytes_accessed=4 * (nt * cin * hw + cin + cin * cin)),
    )(x3)


# ---------------------------------------------------------------------------
# Pass 2: 1x1 conv (MXU) + folded BN affine + ReLU, written directly in the
# final [N, Cout, T*H*W] layout with lane-dense stores.
# ---------------------------------------------------------------------------
def _conv_bn_relu_kernel(x_ref, w_ref, scale_ref, shift_ref, o_ref):
    # x_ref: [Cin, TILE_HW]; w_ref: [Cout, Cin]; scale/shift: [Cout, 1]
    x = x_ref[...].astype(jnp.float32)
    w = w_ref[...].astype(jnp.float32)
    y = jnp.dot(w, x, preferred_element_type=jnp.float32)   # [Cout, TILE_HW]
    y = y * scale_ref[...] + shift_ref[...]                  # folded BN affine
    o_ref[...] = jnp.maximum(y, 0.0).astype(o_ref.dtype)


def _conv_bn_relu(x3, w2, scale, shift, t_seg, tile):
    nt, cin, hw = x3.shape
    cout = w2.shape[0]
    n = nt // t_seg
    tiles_per_frame = hw // tile
    grid = (nt, tiles_per_frame)

    def o_map(i, j):
        # Frame i = n*T + t lands at out[n, :, t*hw + j*tile : ...].
        return (i // t_seg, 0, (i % t_seg) * tiles_per_frame + j)

    return pl.pallas_call(
        _conv_bn_relu_kernel,
        out_shape=jax.ShapeDtypeStruct((n, cout, t_seg * hw), jnp.float32),
        grid_spec=pltpu.PrefetchScalarGridSpec(
            num_scalar_prefetch=0,
            grid=grid,
            in_specs=[
                pl.BlockSpec((None, cin, tile), lambda i, j: (i, 0, j)),
                pl.BlockSpec((cout, cin), lambda i, j: (0, 0)),
                pl.BlockSpec((cout, 1), lambda i, j: (0, 0)),
                pl.BlockSpec((cout, 1), lambda i, j: (0, 0)),
            ],
            out_specs=pl.BlockSpec((None, cout, tile), o_map),
        ),
        compiler_params=pltpu.CompilerParams(
            # Independent output tiles: shard across v7x's two TensorCores.
            dimension_semantics=("parallel", "parallel"),
            vmem_limit_bytes=_VMEM_LIMIT_BYTES),
        cost_estimate=pl.CostEstimate(
            flops=2 * nt * hw * cin * cout + 3 * nt * hw * cout,
            transcendentals=0,
            bytes_accessed=4 * (nt * cin * hw + cout * cin + 2 * cout
                                + nt * cout * hw)),
    )(x3, w2, scale, shift)


def kd_stage_pathway(x_nchw, conv_w, gamma, beta, n_segment, *, eps=1e-5):
    """One pathway of KDStage.

    x_nchw : [NT, Cin, H, W];  conv_w : [Cout, Cin, 1, 1];  gamma/beta : [Cout]
    Returns [NT // n_segment, Cout, n_segment, H, W].
    """
    nt, cin, h, w = x_nchw.shape
    cout = conv_w.shape[0]
    assert nt % n_segment == 0, (nt, n_segment)
    hw = h * w
    tile = _pick_hw_tile(hw)
    if tile == 0:
        # TODO(synk): pad the spatial axis to a multiple of 128 when H*W has
        # no 128-multiple divisor (e.g. 56*56); demo shapes avoid this case.
        raise NotImplementedError(
            f"H*W={hw} has no divisor that is a multiple of 128")

    x3 = x_nchw.reshape(nt, cin, hw)       # free reshape (merge minor dims)
    w2 = conv_w.reshape(cout, cin)         # [Cout, Cin]

    # Pass 1: input stats -> analytic batch statistics of y = conv(x).
    sum_x, gram = _input_stats(x3, tile)
    m = float(nt * hw)                                             # BN count
    mean_y = w2 @ (sum_x[:, 0] / m)                                # [Cout]
    e_y2 = jnp.einsum("oi,ij,oj->o", w2, gram, w2) / m             # [Cout]
    var_y = jnp.maximum(e_y2 - mean_y * mean_y, 0.0)               # biased var
    scale = gamma * jax.lax.rsqrt(var_y + eps)                     # folded BN
    shift = beta - mean_y * scale
    # TODO(synk): running_mean / running_var updates of BatchNorm2d are not
    # produced (only the forward output, as needed for KD).

    # Pass 2: conv + affine + ReLU, output already in (N, Cout, T, H, W) order.
    y = _conv_bn_relu(x3, w2, scale.reshape(cout, 1), shift.reshape(cout, 1),
                      n_segment, tile)
    n = nt // n_segment
    return y.reshape(n, cout, n_segment, h, w)   # free reshape (split minor)


def kd_stage(inputs, params, n_segments):
    """inputs: list of NCHW arrays; params: list of (conv_w, gamma, beta)."""
    out = []
    for x, (cw, g, b), t in zip(inputs, params, n_segments):
        out.append(kd_stage_pathway(x, cw, g, b, t))
    return out


def _ref_pathway(x_nchw, conv_w, gamma, beta, n_segment, eps=1e-5):
    # pure-JAX reference for sanity checking
    nt, cin, h, w = x_nchw.shape
    cout = conv_w.shape[0]
    w2d = conv_w.reshape(cout, cin)
    y = jnp.einsum('nchw,oc->nohw', x_nchw, w2d)
    mean = jnp.mean(y, axis=(0, 2, 3), keepdims=True)
    var = jnp.mean((y - mean) ** 2, axis=(0, 2, 3), keepdims=True)
    y = (y - mean) / jnp.sqrt(var + eps)
    y = y * gamma.reshape(1, cout, 1, 1) + beta.reshape(1, cout, 1, 1)
    y = jnp.maximum(y, 0.0)
    n = nt // n_segment
    return y.reshape(n, n_segment, cout, h, w).transpose(0, 2, 1, 3, 4)


if __name__ == "__main__":
    key = jax.random.PRNGKey(0)

    # Two pathways (slow / fast), small shapes.
    dim_in = [8, 4]
    dim_out = [16, 8]
    n_segments = [4, 4]
    batch = 2
    H = W = 16

    inputs = []
    params = []
    for p in range(len(dim_in)):
        key, k_x, k_w, k_g, k_b = jax.random.split(key, 5)
        nt = batch * n_segments[p]
        x = jax.random.normal(k_x, (nt, dim_in[p], H, W), dtype=jnp.float32)
        conv_w = jax.random.normal(
            k_w, (dim_out[p], dim_in[p], 1, 1), dtype=jnp.float32) * 0.1
        gamma = 1.0 + 0.1 * jax.random.normal(k_g, (dim_out[p],), jnp.float32)
        beta = 0.1 * jax.random.normal(k_b, (dim_out[p],), jnp.float32)
        inputs.append(x)
        params.append((conv_w, gamma, beta))

    outs = kd_stage(inputs, params, n_segments)
    outs = [jax.block_until_ready(o) for o in outs]

    # sanity check vs pure-JAX reference
    for p in range(len(dim_in)):
        ref = _ref_pathway(inputs[p], *params[p], n_segments[p])
        assert outs[p].shape == (batch, dim_out[p], n_segments[p], H, W), \
            outs[p].shape
        np.testing.assert_allclose(np.asarray(outs[p]), np.asarray(ref),
                                   rtol=1e-4, atol=1e-4)

    print("KERNEL_OK")
</pallas_src>

<mosaic_0001>
module attributes {stable_mosaic.version = 11 : i64} {
  func.func @_stats_kernel(%arg0: i32, %arg1: i32, %arg2: memref<1x8x256xf32, #tpu.memory_space<vmem>>, %arg3: memref<8x1xf32, #tpu.memory_space<vmem>>, %arg4: memref<8x8xf32, #tpu.memory_space<vmem>>) attributes {dimension_semantics = [#tpu.dimension_semantics<arbitrary>, #tpu.dimension_semantics<arbitrary>], iteration_bounds = array<i64: 8, 1>, scalar_prefetch = 0 : i64, scratch_operands = 0 : i64, tpu.core_type = #tpu.core_type<tc>, window_params = [{transform_indices = @transform_0, window_bounds = array<i64: 1, 8, 256>}, {pipeline_mode = #tpu.pipeline_mode<synchronous>, transform_indices = @transform_1, window_bounds = array<i64: 8, 1>}, {pipeline_mode = #tpu.pipeline_mode<synchronous>, transform_indices = @transform_2, window_bounds = array<i64: 8, 8>}]} {
    %c0_i32 = arith.constant 0 : i32
    %0 = arith.cmpi eq, %arg0, %c0_i32 : i32
    %c0_i32_0 = arith.constant 0 : i32
    %1 = arith.cmpi eq, %arg1, %c0_i32_0 : i32
    %2 = arith.andi %0, %1 : i1
    %3 = arith.extui %2 : i1 to i32
    %c0_i32_1 = arith.constant 0 : i32
    %4 = arith.cmpi ne, %3, %c0_i32_1 : i32
    scf.if %4 {
      %cst_13 = arith.constant 0.000000e+00 : f32
      %16 = vector.broadcast %cst_13 : f32 to vector<8x1xf32>
      %c0_14 = arith.constant 0 : index
      %c0_15 = arith.constant 0 : index
      %17 = vector.load %arg3[%c0_14, %c0_15] : memref<8x1xf32, #tpu.memory_space<vmem>>, vector<8x1xf32>
      tpu.vector_store %arg3[%c0_14, %c0_15], %16 {strides = array<i32>} : memref<8x1xf32, #tpu.memory_space<vmem>>, vector<8x1xf32>,
      %cst_16 = arith.constant 0.000000e+00 : f32
      %18 = vector.broadcast %cst_16 : f32 to vector<8x8xf32>
      %c0_17 = arith.constant 0 : index
      %c0_18 = arith.constant 0 : index
      %19 = vector.load %arg4[%c0_17, %c0_18] : memref<8x8xf32, #tpu.memory_space<vmem>>, vector<8x8xf32>
      tpu.vector_store %arg4[%c0_17, %c0_18], %18 {strides = array<i32>} : memref<8x8xf32, #tpu.memory_space<vmem>>, vector<8x8xf32>,
    } else {
    }
    %c0 = arith.constant 0 : index
    %c0_2 = arith.constant 0 : index
    %c0_3 = arith.constant 0 : index
    %5 = vector.load %arg2[%c0, %c0_2, %c0_3] : memref<1x8x256xf32, #tpu.memory_space<vmem>>, vector<1x8x256xf32>
    %6 = vector.shape_cast %5 : vector<1x8x256xf32> to vector<8x256xf32>
    %c0_4 = arith.constant 0 : index
    %c0_5 = arith.constant 0 : index
    %7 = vector.load %arg3[%c0_4, %c0_5] : memref<8x1xf32, #tpu.memory_space<vmem>>, vector<8x1xf32>
    %cst = arith.constant dense<0.000000e+00> : vector<8xf32>
    %8 = vector.multi_reduction <add>, %6, %cst [1] : vector<8x256xf32> to vector<8xf32>
    %9 = vector.shape_cast %8 : vector<8xf32> to vector<8x1xf32>
    %10 = arith.addf %7, %9 : vector<8x1xf32>
    %c0_6 = arith.constant 0 : index
    %c0_7 = arith.constant 0 : index
    %11 = vector.load %arg3[%c0_6, %c0_7] : memref<8x1xf32, #tpu.memory_space<vmem>>, vector<8x1xf32>
    tpu.vector_store %arg3[%c0_6, %c0_7], %10 {strides = array<i32>} : memref<8x1xf32, #tpu.memory_space<vmem>>, vector<8x1xf32>,
    %c0_8 = arith.constant 0 : index
    %c0_9 = arith.constant 0 : index
    %12 = vector.load %arg4[%c0_8, %c0_9] : memref<8x8xf32, #tpu.memory_space<vmem>>, vector<8x8xf32>
    %cst_10 = arith.constant dense<0.000000e+00> : vector<8x8xf32>
    %13 = tpu.matmul %6, %6, %cst_10 {dimension_numbers = #tpu.dot_dimension_numbers<[1], [1], [0], [0], [0, 0, 1, 0], [], []>} : vector<8x256xf32>, vector<8x256xf32>, vector<8x8xf32> -> vector<8x8xf32>
    %14 = arith.addf %12, %13 : vector<8x8xf32>
    %c0_11 = arith.constant 0 : index
    %c0_12 = arith.constant 0 : index
    %15 = vector.load %arg4[%c0_11, %c0_12] : memref<8x8xf32, #tpu.memory_space<vmem>>, vector<8x8xf32>
    tpu.vector_store %arg4[%c0_11, %c0_12], %14 {strides = array<i32>} : memref<8x8xf32, #tpu.memory_space<vmem>>, vector<8x8xf32>,
    return
  }
  func.func @transform_0(%arg0: i32, %arg1: i32) -> (i32, i32, i32) {
    %c0_i32 = arith.constant 0 : i32
    %c0_i32_0 = arith.constant 0 : i32
    return %arg0, %c0_i32, %arg1 : i32, i32, i32
  }
  func.func @transform_1(%arg0: i32, %arg1: i32) -> (i32, i32) {
    %c0_i32 = arith.constant 0 : i32
    %c0_i32_0 = arith.constant 0 : i32
    %c0_i32_1 = arith.constant 0 : i32
    return %c0_i32, %c0_i32_0 : i32, i32
  }
  func.func @transform_2(%arg0: i32, %arg1: i32) -> (i32, i32) {
    %c0_i32 = arith.constant 0 : i32
    %c0_i32_0 = arith.constant 0 : i32
    %c0_i32_1 = arith.constant 0 : i32
    return %c0_i32, %c0_i32_0 : i32, i32
  }
}

</mosaic_0001>

<bundles_post_ra>
// kernel: tpu_custom_call.1
= control target key start
LH: loop header
LB: loop body
LE: loop exit
PB: predicated region body
PF: predicated region fallthrough
CT: control target
= control target key end

     0   :  { %8 = vsyncpa [#allocation3], 0  ;;  %s659_s0 = inlined_call_operand.hbm [shape: f32[8,8,256], index: 0, kind: input, shape index: {}]   ;;  %s660_s1 = inlined_call_operand.vmem [shape: f32[8,1], index: 1, kind: output, shape index: {0}]   ;;  %s661_s2 = inlined_call_operand.hbm [shape: f32[8,8], index: 2, kind: output, shape index: {1}]  }
   0x1   :  { %10 = vsyncpa [#allocation3 + $0x1], 0 }
   0x2   :  { %11 = vsyncpa [#allocation4], 0  ;;  %s535_s9 = smov 0   ;;  %s537_s10 = smov 0  }
   0x3   :  { %s539_s11 = smov 0   ;;  %s541_s12 = smov 0  }
   0x4   :  { %s543_s13 = smov 0   ;;  %s545_s14 = smov 0  }
   0x5 LB: > { %s331_s15 = sadd.s32 4294967295, %s515_s14   ;;  %s29_s16 = sadd.s32 1, %s511_s13  ;;  %s515_s14 = sphi %s545_s14, %s17_s14   ;;  %s511_s13 = sphi %s543_s13, %s670_s13   ;;  %s507_s12 = sphi %s541_s12, %s669_s12   ;;  %s503_s11 = sphi %s539_s11, %s668_s11   ;;  %s499_s10 = sphi %s537_s10, %s667_s10   ;;  %s495_s9 = sphi %s535_s9, %s666_s9  }
   0x6   : > { %p31_p0 = scmp.ge.s32.totalorder %s29_s16, 8  ;;  %s38_s17 = sadd.s32 1, %s503_s11 }
   0x7   : > { %p45_p1 = scmp.ne.s32.totalorder %s503_s11, %s499_s10  ;;  %p46_p2 = scmp.eq.s32.totalorder %s515_s14, 0 }
   0x8   : > { %s672_s16 = smov (%p31_p0, %s29_s16), 0  ;;  %p51_p4 = scmp.ne.s32.totalorder %s499_s10, %s495_s9 }
   0x9   : > { %p571_p3 = por %p46_p2, %p45_p1  ;;  %s33_s19 = ssub.s32 %s511_s13, %s672_s16 }
   0xa   : > { %p52_p5 = scmp.eq.s32.totalorder %s331_s15, 0  ;;  %p36_p6 = scmp.eq.s32.totalorder %s33_s19, 0 }
   0xb   : > { %p356_p8 = scmp.lt.s32.totalorder %s515_s14, 8  ;;  %s117_s22 = sand.u32 1, %s503_s11  }
   0xc   : > { %p580_p7 = por %p52_p5, %p51_p4  ;;  %s344_s23 = sshll.u32 %s511_s13, 8 }
   0xd   : > { %s586_s21 = scalar_select %p36_p6, %s503_s11, %s38_s17  }
   0xe   : > { %s334_s24 = sshll.u32 %s117_s22, 4  ;;  %s129_s27 = scalar_lea.hbm %s659_s0, %s344_s23 }
   0xf   : > { %s121_s28 = scalar_lea.vmem [#allocation2], %s334_s24  ;;  %p595_p9 = pnand %p356_p8, %p571_p3 }
  0x10   : > { %s131_s29 = sshll.u32 %s121_s28, 4  ;;  %p337_p10 = scmp.ge.s32.totalorder %s515_s14, 1  ;;  %s132_s29 = int_to_ptr.vmem [resolvable:$true] %s131_s29 }
  0x11   : > { %p136_p11 = scmp.lt.s32.totalorder %s515_s14, 9  ;;  %s118_s3 = scalar_lea.sflag [#allocation3], %s117_s22 }
  0x12   : > { %p411_p12 = pneg %p595_p9  ;;  %s422_s4 = scalar_lea.vmem %s132_s29, 256 }
  0x13   : > { %p423_p13 = scmp.ne.s32.totalorder %s132_s29, %s422_s4  ;;  %s517_s5 = smov [#allocation2]  }
  0x14   : > { %s427_s6 = sshll.u32 %s517_s5, 4  ;;  %s428_s6 = int_to_ptr.vmem [resolvable:$false] %s427_s6 }
  0x15   : > { %p425_p0 = pnand %p423_p13, %p411_p12  ;;  %s429_s7 = scalar_lea.vmem %s428_s6, 512 }
  0x16   : > { %p430_p2 = scmp.lt.s32.totalorder %s132_s29, %s428_s6  ;;  %p431_p3 = scmp.lt.s32.totalorder %s429_s7, %s422_s4 }
  0x17   : > { %p426_p1 = pneg %p425_p0 }
  0x18   : > { %p432_p4 = por %p431_p3, %p430_p2 }
  0x1a   : > { %p433_p5 = pnand %p432_p4, %p426_p1 }
  0x1c   : > { %436 = shalt.err (!%p433_p5)
}
  0x1d   : > { %355 = dma.hbm_to_vmem [thread:$0]  (!%p595_p9), %s129_s27, 256, %s132_s29, %s118_s3  }
  0x1e   : > { %p137_p6 = pnand %p337_p10, %p136_p11 }
  0x1f   : > { %s142_s8 = sand.u32 (!%p137_p6), 1, %s499_s10  }
  0x20   : > { %140 = sbr.rel (%p137_p6) target bundleno = 250 (0xfa), region = 24  ;;  %s338_s9 = sshll.u32 (!%p137_p6), %s142_s8, 4 }
  0x21   : > { %s143_s17 = scalar_lea.sflag (!%p137_p6), [#allocation3], %s142_s8  ;;  %s146_s18 = scalar_lea.vmem (!%p137_p6), [#allocation2], %s338_s9 }
  0x25   : > { %486 = dma.done.wait (%p580_p7), %s143_s17, 256  }
  0x26   : > { %488 = vsyncadd (%p580_p7), %s143_s17, 4294967040  ;;  %p163_p8 = scmp.eq.s32.totalorder %s507_s12, 0 }
  0x27   : > { %vm169_vm0 = vcmask (%p163_p8), 7168   ;;  %vm171_vm1 = vcmask (%p163_p8), 64512   ;;  %v518_v0 = vmov (%p163_p8), 0.0  }
  0x28   : > { %168 = sbr.rel (!%p163_p8) target bundleno = 45 (0x2d), region = 32  ;;  %170 = vst.msk [vmem:[%s660_s1] sm:$0xff] (%p163_p8), %vm169_vm0, %v518_v0 }
  0x29   : > { %172 = vst.msk [vmem:[#allocation5] sm:$0xff] (%p163_p8), %vm171_vm1, %v518_v0 }
  0x2d PF: > { %v174_v1 = vld [vmem:[%s146_s18 + $0x8] sm:$0xff]  ;;  %v173_v2 = vld [vmem:[%s146_s18] sm:$0xff]  ;;  %vm180_vm2 = vcmask 7168   ;;  %s519_s25 = smov [#allocation5]   ;;  %vm254_vm3 = vcmask 64512   ;;  %p626_p7 = scmp.eq.s32.totalorder %s331_s15, 7 }
  0x2e   : > { %213 = vmatprep.subr.mxu0 %v174_v1  ;;  %247 = vmatprep.mubr.f32.mxu0 %v174_v1  ;;  %v176_v3 = vadd.f32 %v174_v1, %v173_v2  ;;  %s266_s26 = sshll.u32 %s519_s25, 4  ;;  %s267_s26 = int_to_ptr.vmem [resolvable:$true] %s266_s26 }
  0x2f   : > { %214 = vmatpush1.xpose.msra.mxu0 %v173_v2  ;;  %v175_v4 = vld [vmem:[%s660_s1] sm:$0xff]  ;;  %s437_s28 = scalar_lea.vmem %s267_s26, 128  ;;  %p444_p12 = scmp.lt.s32.totalorder %s267_s26, %s267_s26 }
  0x30   : > { %177 = vadd.xlane.f32.xlu0 %v176_v3  ;;  %v182_v7 = vld [vmem:[#allocation5] sm:$0xff]  ;;  %p438_p9 = scmp.ne.s32.totalorder %s267_s26, %s437_s28  ;;  %p445_p13 = scmp.lt.s32.totalorder %s437_s28, %s437_s28 }
  0x32   : > { %248 = vmatmul.mubr.f32.vlgmr.msra.gmra.mxu0 %v173_v2  ;;  %p439_p10 = pnand %p438_p9, %p626_p7  ;;  %p446_p0 = por %p445_p13, %p444_p12 }
  0x34   : > { %p440_p11 = pneg %p439_p10 }
  0x36   : > { %p447_p1 = pnand %p446_p0, %p440_p11 }
  0xb9   : > { %v178_v5 = vpop.xlane.xlu0 %177 }
  0xba   : > { %v179_v6 = vadd.f32 %v178_v5, %v175_v4 }
  0xbc   : > { %181 = vst.msk [vmem:[%s660_s1] sm:$0xff] %vm180_vm2, %v179_v6 }
  0xf2   : > { %v249_v8 = vpop.f32.mrf.mxu0 }
  0xf3   : > { %v253_v9 = vadd.f32 %v249_v8, %v182_v7 }
  0xf4   : > { %v251_v10 = vpop.f32.mrf.mxu0 }
  0xf5   : > { %255 = vst.msk [vmem:[#allocation5] sm:$0xff] %vm254_vm3, %v253_v9 }
  0xf6   : > { %450 = shalt.err (!%p447_p1)
}
  0xf7   : > { %349 = dma.vmem_to_hbm [thread:$0]  (%p626_p7), %s267_s26, 128, %s661_s2, [#allocation4]  }
  0xf8   : > { %490 = dma.done.wait (%p626_p7), [#allocation4], 128  }
  0xf9   : > { %492 = vsyncadd (%p626_p7), [#allocation4], 4294967168 }
  0xfa PF: > { %s17_s14 = sadd.s32 1, %s515_s14   ;;  %s666_s9 = smov %s499_s10 }
  0xfb   : > { %p14_p2 = scmp.ge.s32.totalorder %s17_s14, 10   ;;  %s667_s10 = smov %s503_s11 }
  0xfc   : > { %s668_s11 = smov %s586_s21  ;;  %s669_s12 = smov %s511_s13 }
  0xfd   : > { %s670_s13 = smov %s672_s16  ;;  %16 = sbr.rel (!%p14_p2) target bundleno = 5 (0x5), region = 73 }
 0x102   :  { %282 = vsyncpa [#allocation3], 1 }
 0x103   :  { %284 = vsyncpa [#allocation3 + $0x1], 1 }
 0x104   :  { %285 = vsyncpa [#allocation4], 1 }
 0x105   :  { %287 = vsyncpa [#allocation4 + $0x1], 1 }

</bundles_post_ra>
